<compile_context>
chip_gen: v7x
topology: tpu7x:2x2x1
jax: 0.10.0
libtpu: 0.0.40
codegen_flags: <defaults>
</compile_context>

<pallas_src>
import jax
import jax.numpy as jnp
from jax.experimental import pallas as pl
from jax.experimental.pallas import tpu as pltpu


_VMEM_LIMIT_BYTES = 32 * 1024 * 1024   # scoped-VMEM request; safe on v5e/v6e/v7x
_PIPELINE_BUDGET = 12 * 1024 * 1024    # target double-buffered pipeline footprint


def _sublane(itemsize: int) -> int:
    # dtype-dependent sublane packing: f32 -> 8, bf16 -> 16, int8/fp8 -> 32.
    return max(8, 32 // max(1, itemsize))


def _round_up(n: int, m: int) -> int:
    return -(-n // m) * m


def square_cat_kernel(x_ref, o_ref):
    # Full-width row tile: o[:, :d] = x, o[:, d:] = x*x (concat layout).
    x = x_ref[...]
    d = x.shape[-1]
    o_ref[:, :d] = x
    o_ref[:, d:] = x * x


def square_cat_col_kernel(x_ref, o_ref):
    # Column-tiled variant: output viewed as (rows, 2, d); same memory layout.
    x = x_ref[...]
    o_ref[:, 0, :] = x
    o_ref[:, 1, :] = x * x


def _row_tile(rows: int, d: int, itemsize: int) -> int:
    sub = _sublane(itemsize)
    if rows <= sub:
        return max(rows, 1)  # truly tiny: a single (possibly partial) block
    # Double-buffered footprint ~= 2*(tile_r*d + tile_r*2*d)*itemsize = 6*tile_r*d*itemsize.
    t = _PIPELINE_BUDGET // (6 * max(1, d) * itemsize)
    t = max(sub, (t // sub) * sub)
    # Keep the grid >= 2 steps (>= 8 once the slab is non-trivial) so the
    # pipeline overlaps DMA with compute and v7x can shard rows across 2 TCs.
    total_bytes = rows * d * itemsize
    min_steps = 8 if total_bytes > 2 * 1024 * 1024 else 2
    cap = _round_up(-(-rows // min_steps), sub)
    t = min(t, cap, _round_up(rows, sub))
    return max(t, sub)


def _square_layer_rowtiled(x2d, rows, d, itemsize):
    tile_r = _row_tile(rows, d, itemsize)
    grid = (pl.cdiv(rows, tile_r),)
    return pl.pallas_call(
        square_cat_kernel,
        out_shape=jax.ShapeDtypeStruct((rows, 2 * d), x2d.dtype),
        grid_spec=pltpu.PrefetchScalarGridSpec(
            num_scalar_prefetch=0,
            grid=grid,
            in_specs=[pl.BlockSpec((tile_r, d), lambda i: (i, 0))],
            out_specs=pl.BlockSpec((tile_r, 2 * d), lambda i: (i, 0)),
        ),
        compiler_params=pltpu.CompilerParams(
            dimension_semantics=("parallel",),
            vmem_limit_bytes=_VMEM_LIMIT_BYTES,
        ),
        cost_estimate=pl.CostEstimate(
            flops=rows * d,
            transcendentals=0,
            bytes_accessed=3 * rows * d * itemsize,
        ),
    )(x2d)


def _square_layer_coltiled(x2d, rows, d, itemsize):
    # Huge-d guard: column-tile the feature dim; output declared (rows, 2, d)
    # so each (row, column-tile) pair is one rectangular output block.
    sub = _sublane(itemsize)
    tile_r = max(sub, min(8 * sub, _round_up(rows, sub)))
    # The size-2 second-minor dim of the out block pads to 8 sublanes in VMEM,
    # so budget the out buffer at 4x -> footprint ~= 18*tile_r*tile_d*itemsize.
    tile_d = _PIPELINE_BUDGET // (18 * tile_r * itemsize)
    tile_d = max(128, (tile_d // 128) * 128)
    grid = (pl.cdiv(rows, tile_r), pl.cdiv(d, tile_d))
    out3d = pl.pallas_call(
        square_cat_col_kernel,
        out_shape=jax.ShapeDtypeStruct((rows, 2, d), x2d.dtype),
        grid_spec=pltpu.PrefetchScalarGridSpec(
            num_scalar_prefetch=0,
            grid=grid,
            in_specs=[pl.BlockSpec((tile_r, tile_d), lambda i, j: (i, j))],
            out_specs=pl.BlockSpec((tile_r, 2, tile_d), lambda i, j: (i, 0, j)),
        ),
        compiler_params=pltpu.CompilerParams(
            dimension_semantics=("parallel", "parallel"),
            vmem_limit_bytes=_VMEM_LIMIT_BYTES,
        ),
        cost_estimate=pl.CostEstimate(
            flops=rows * d,
            transcendentals=0,
            bytes_accessed=3 * rows * d * itemsize,
        ),
    )(x2d)
    return out3d.reshape(rows, 2 * d)  # free: merges contiguous dims only


def square_layer(x: jax.Array) -> jax.Array:
    orig_shape = x.shape
    d = orig_shape[-1]
    rows = 1
    for s in orig_shape[:-1]:
        rows *= s
    x2d = x.reshape(rows, d)  # free: merges contiguous leading dims only

    itemsize = jnp.dtype(x.dtype).itemsize
    sub = _sublane(itemsize)
    # If even the smallest full-width row tile (sub rows x d cols) exceeds the
    # pipeline budget, column-tile the feature dim instead (very wide d).
    if d > 128 and 6 * sub * d * itemsize > _PIPELINE_BUDGET:
        out2d = _square_layer_coltiled(x2d, rows, d, itemsize)
    else:
        out2d = _square_layer_rowtiled(x2d, rows, d, itemsize)

    return out2d.reshape(*orig_shape[:-1], 2 * d)


if __name__ == "__main__":
    key = jax.random.PRNGKey(0)

    # Primary test: the module's forward at the spec'd small shape (2 grid steps).
    x = jax.random.normal(key, (2, 4, 16, 16), dtype=jnp.float32)
    out = square_layer(x)
    jax.block_until_ready(out)
    ref = jnp.concatenate([x, x ** 2], axis=-1)
    assert out.shape == ref.shape, (out.shape, ref.shape)
    assert jnp.allclose(out, ref), "mismatch vs reference (primary)"

    # Ragged last row-block: rows=15 with tile_r=8 -> blocks of 8 and 7.
    k1, k2 = jax.random.split(key)
    y = jax.random.normal(k1, (3, 5, 16), dtype=jnp.float32)
    out_y = square_layer(y)
    jax.block_until_ready(out_y)
    assert jnp.allclose(out_y, jnp.concatenate([y, y ** 2], axis=-1)), "ragged rows"

    # Lane-aligned d (multiple of 128): unmasked half-tile stores.
    z = jax.random.normal(k2, (4, 16, 128), dtype=jnp.float32)
    out_z = square_layer(z)
    jax.block_until_ready(out_z)
    assert jnp.allclose(out_z, jnp.concatenate([z, z ** 2], axis=-1)), "aligned d"

    # bf16 sublane-granularity (sub=16) branch of _row_tile.
    w = jax.random.normal(key, (4, 40, 24), dtype=jnp.bfloat16)
    out_w = square_layer(w)
    jax.block_until_ready(out_w)
    ref_w = jnp.concatenate([w, w * w], axis=-1)
    assert out_w.dtype == ref_w.dtype
    assert jnp.allclose(out_w.astype(jnp.float32), ref_w.astype(jnp.float32)), "bf16"

    print("KERNEL_OK")
</pallas_src>

<mosaic_0001>
module attributes {stable_mosaic.version = 11 : i64} {
  func.func @square_cat_kernel(%arg0: i32, %arg1: memref<64x16xf32, #tpu.memory_space<vmem>>, %arg2: memref<64x32xf32, #tpu.memory_space<vmem>>) attributes {dimension_semantics = [#tpu.dimension_semantics<parallel>], iteration_bounds = array<i64: 2>, scalar_prefetch = 0 : i64, scratch_operands = 0 : i64, tpu.core_type = #tpu.core_type<tc>, window_params = [{transform_indices = @transform_0, window_bounds = array<i64: 64, 16>}, {transform_indices = @transform_1, window_bounds = array<i64: 64, 32>}]} {
    %c0 = arith.constant 0 : index
    %c0_0 = arith.constant 0 : index
    %0 = vector.load %arg1[%c0, %c0_0] : memref<64x16xf32, #tpu.memory_space<vmem>>, vector<64x16xf32>
    %c0_1 = arith.constant 0 : index
    %c0_2 = arith.constant 0 : index
    %1 = vector.load %arg2[%c0_1, %c0_2] : memref<64x32xf32, #tpu.memory_space<vmem>>, vector<64x16xf32>
    tpu.vector_store %arg2[%c0_1, %c0_2], %0 {strides = array<i32>} : memref<64x32xf32, #tpu.memory_space<vmem>>, vector<64x16xf32>,
    %2 = arith.mulf %0, %0 : vector<64x16xf32>
    %c0_3 = arith.constant 0 : index
    %c16 = arith.constant 16 : index
    %3 = vector.load %arg2[%c0_3, %c16] : memref<64x32xf32, #tpu.memory_space<vmem>>, vector<64x16xf32>
    tpu.vector_store %arg2[%c0_3, %c16], %2 {strides = array<i32>} : memref<64x32xf32, #tpu.memory_space<vmem>>, vector<64x16xf32>,
    return
  }
  func.func @transform_0(%arg0: i32) -> (i32, i32) {
    %c0_i32 = arith.constant 0 : i32
    %c0_i32_0 = arith.constant 0 : i32
    return %arg0, %c0_i32 : i32, i32
  }
  func.func @transform_1(%arg0: i32) -> (i32, i32) {
    %c0_i32 = arith.constant 0 : i32
    %c0_i32_0 = arith.constant 0 : i32
    return %arg0, %c0_i32 : i32, i32
  }
}

</mosaic_0001>

<bundles_post_ra>
// kernel: tpu_custom_call.1
= control target key start
LH: loop header
LB: loop body
LE: loop exit
PB: predicated region body
PF: predicated region fallthrough
CT: control target
= control target key end

     0   :  { %s281_s6 = smov 0   ;;  %s332_s0 = inlined_call_operand.vmem [shape: f32[128,16], index: 0, kind: input, shape index: {}]   ;;  %s333_s1 = inlined_call_operand.vmem [shape: f32[128,32], index: 1, kind: output, shape index: {}]  }
   0x1 LB: > { %s242_s7 = sadd.s32 4294967295, %s268_s6   ;;  %p246_p0 = scmp.ge.s32.totalorder %s268_s6, 1  ;;  %s268_s6 = sphi %s281_s6, %s11_s6  }
   0x2   : > { %p88_p1 = scmp.lt.s32.totalorder %s268_s6, 3 }
   0x4   : > { %p89_p2 = pnand %p246_p0, %p88_p1 }
   0x5   : > { %s247_s8 = sshll.u32 (!%p89_p2), %s242_s7, 3  ;;  %vm128_vm0 = vcmask (!%p89_p2), 130048   ;;  %s270_s16 = smov (!%p89_p2), 16   ;;  %vm177_vm1 = vcmask (!%p89_p2), 261248  }
   0x6   : > { %92 = sbr.rel (%p89_p2) target bundleno = 148 (0x94), region = 24  ;;  %p109_p3 = scmp.lt.s32.totalorder (!%p89_p2), %s247_s8, 15 }
   0xd   : > { %s335_s8 = smov (!%p109_p3, %s247_s8), 15 }
   0xe   : > { %s248_s9 = sshll.u32 %s335_s8, 3 }
   0xf   : > { %s112_s12 = scalar_lea.vmem %s332_s0, %s248_s9  ;;  %s295_s15 = scalar_lea.vmem %s333_s1, %s248_s9 }
  0x10   : > { %v122_v0 = vld [vmem:[%s112_s12 + $0x10] sm:$0xff]  ;;  %v120_v1 = vld [vmem:[%s112_s12] sm:$0xff]  ;;  %v123_v2 = vld [vmem:[%s112_s12 + $0x18] sm:$0xff] }
  0x11   : > { %v139_v3 = vmul.f32 %v122_v0, %v122_v0  ;;  %131 = vst.msk [vmem:[%s295_s15 + $0x10] sm:$0xff] %vm128_vm0, %v122_v0  ;;  %v137_v4 = vmul.f32 %v120_v1, %v120_v1  ;;  %129 = vst.msk [vmem:[%s295_s15] sm:$0xff] %vm128_vm0, %v120_v1  ;;  %v121_v5 = vld [vmem:[%s112_s12 + $0x8] sm:$0xff]  ;;  %v124_v7 = vld [vmem:[%s112_s12 + $0x20] sm:$0xff]  ;;  %v140_v10 = vmul.f32 %v123_v2, %v123_v2 }
  0x12   : > { %132 = vst.msk [vmem:[%s295_s15 + $0x18] sm:$0xff] %vm128_vm0, %v123_v2  ;;  %v125_v6 = vld [vmem:[%s112_s12 + $0x28] sm:$0xff]  ;;  %130 = vst.msk [vmem:[%s295_s15 + $0x8] sm:$0xff] %vm128_vm0, %v121_v5  ;;  %v127_v8 = vld [vmem:[%s112_s12 + $0x38] sm:$0xff]  ;;  %v138_v11 = vmul.f32 %v121_v5, %v121_v5  ;;  %v141_v13 = vmul.f32 %v124_v7, %v124_v7 }
  0x13   : > { %134 = vst.msk [vmem:[%s295_s15 + $0x28] sm:$0xff] %vm128_vm0, %v125_v6  ;;  %133 = vst.msk [vmem:[%s295_s15 + $0x20] sm:$0xff] %vm128_vm0, %v124_v7  ;;  %v126_v9 = vld [vmem:[%s112_s12 + $0x30] sm:$0xff]  ;;  %157 = vrot.lane.b32.xlu1 %v139_v3, %s270_s16  ;;  %v142_v12 = vmul.f32 %v125_v6, %v125_v6  ;;  %v144_v14 = vmul.f32 %v127_v8, %v127_v8 }
  0x14   : > { %153 = vrot.lane.b32.xlu0 %v137_v4, %s270_s16  ;;  %136 = vst.msk [vmem:[%s295_s15 + $0x38] sm:$0xff] %vm128_vm0, %v127_v8  ;;  %135 = vst.msk [vmem:[%s295_s15 + $0x30] sm:$0xff] %vm128_vm0, %v126_v9  ;;  %v143_v15 = vmul.f32 %v126_v9, %v126_v9 }
  0x17   : > { %159 = vrot.lane.b32.xlu1 %v140_v10, %s270_s16 }
  0x18   : > { %155 = vrot.lane.b32.xlu0 %v138_v11, %s270_s16 }
  0x1b   : > { %163 = vrot.lane.b32.xlu1 %v142_v12, %s270_s16 }
  0x1c   : > { %161 = vrot.lane.b32.xlu0 %v141_v13, %s270_s16 }
  0x1f   : > { %167 = vrot.lane.b32.xlu1 %v144_v14, %s270_s16 }
  0x20   : > { %165 = vrot.lane.b32.xlu0 %v143_v15, %s270_s16 }
  0x85   : > { %v158_v16 = vpop.permute.xlu1 %157 }
  0x86   : > { %v154_v17 = vpop.permute.xlu0 %153  ;;  %180 = vst.msk [vmem:[%s295_s15 + $0x10] sm:$0xff] %vm177_vm1, %v158_v16 }
  0x87   : > { %178 = vst.msk [vmem:[%s295_s15] sm:$0xff] %vm177_vm1, %v154_v17 }
  0x89   : > { %v160_v18 = vpop.permute.xlu1 %159 }
  0x8a   : > { %v156_v19 = vpop.permute.xlu0 %155  ;;  %181 = vst.msk [vmem:[%s295_s15 + $0x18] sm:$0xff] %vm177_vm1, %v160_v18 }
  0x8b   : > { %179 = vst.msk [vmem:[%s295_s15 + $0x8] sm:$0xff] %vm177_vm1, %v156_v19 }
  0x8d   : > { %v164_v20 = vpop.permute.xlu1 %163 }
  0x8e   : > { %v162_v21 = vpop.permute.xlu0 %161  ;;  %183 = vst.msk [vmem:[%s295_s15 + $0x28] sm:$0xff] %vm177_vm1, %v164_v20 }
  0x8f   : > { %182 = vst.msk [vmem:[%s295_s15 + $0x20] sm:$0xff] %vm177_vm1, %v162_v21 }
  0x91   : > { %v168_v22 = vpop.permute.xlu1 %167 }
  0x92   : > { %v166_v23 = vpop.permute.xlu0 %165  ;;  %185 = vst.msk [vmem:[%s295_s15 + $0x38] sm:$0xff] %vm177_vm1, %v168_v22 }
  0x93   : > { %184 = vst.msk [vmem:[%s295_s15 + $0x30] sm:$0xff] %vm177_vm1, %v166_v23 }
  0x94 PF: > { %s11_s6 = sadd.s32 1, %s268_s6  }
  0x95   : > { %p8_p4 = scmp.ge.s32.totalorder %s11_s6, 4  }
  0x97   :  { %10 = sbr.rel (!%p8_p4) target bundleno = 1 (0x1), region = 54 }

</bundles_post_ra>
